<compile_context>
chip_gen: v6e
topology: v6e:2x2x1
jax: 0.10.0
libtpu: 0.0.40
codegen_flags: <defaults>
</compile_context>

<pallas_src>
import functools

import jax
import jax.numpy as jnp
import numpy as np
from jax.experimental import pallas as pl
from jax.experimental.pallas import tpu as pltpu

EPS = 1e-5  # nn.BatchNorm2d default
_TAPS = tuple((dh, dw) for dh in (-1, 0, 1) for dw in (-1, 0, 1))


# ---------------------------------------------------------------------------
# Pallas kernel
# ---------------------------------------------------------------------------
def basic_block_kernel(x_ref, w1_ref, g1_ref, b1_ref, w2_ref, g2_ref, b2_ref,
                       o_ref, *, height, width):
    B, C, HW = x_ref.shape
    # Activations arrive bf16 (halves the HBM->VMEM input DMA); widen once for
    # the residual / tap / BN elementwise math (keeps v5e's f32-only VPU path).
    x = x_ref[...].astype(jnp.float32)                        # (B, C, HW)

    # ---- 3x3 edge masks: built ONCE at kernel top, reused by both convs ----
    # W is a power of two, so w = p & (W-1); the h-edge conditions only need
    # comparisons on the flattened index itself.
    pidx = jax.lax.broadcasted_iota(jnp.int32, (1, 1, HW), 2)
    widx = jnp.bitwise_and(pidx, width - 1)
    masks = []
    for dh, dw in _TAPS:
        conds = []
        if dh == -1:
            conds.append(pidx >= width)                       # h-1 >= 0
        if dh == 1:
            conds.append(pidx < (height - 1) * width)         # h+1 <= H-1
        if dw == -1:
            conds.append(widx >= 1)                           # w-1 >= 0
        if dw == 1:
            conds.append(widx <= width - 2)                   # w+1 <= W-1
        masks.append(functools.reduce(jnp.logical_and, conds) if conds else None)

    def tap(inp, i):
        """Shifted + edge-masked copy of `inp` for 3x3 tap i (keeps dtype)."""
        dh, dw = _TAPS[i]
        d = dh * width + dw
        # Single-op XLU lane rotate; the XLU slot is otherwise idle here while
        # the VPU / load-store slots are the binding units at small C.
        t = inp if d == 0 else pltpu.roll(inp, (-d) % HW, 2)
        m = masks[i]
        return t if m is None else jnp.where(m, t, 0.0)

    def dot_batched(w2d, x3d):
        # (Co, K) @ (B, K, HW) -> (B, Co, HW).  Unrolled over the small batch
        # so every step is a clean 2D MXU matmul with f32 accumulation and the
        # weights are never broadcast / duplicated per batch element.
        return jnp.stack(
            [jnp.dot(w2d, x3d[b], preferred_element_type=jnp.float32)
             for b in range(B)], axis=0)

    def conv3x3(inp, w_ref):
        """3x3, stride 1, pad 1, no bias. inp: (B,C,HW) f32, w_ref: (Co,9C) bf16."""
        w = w_ref[...]
        if 9 * C <= 256:
            # Small C (this test): K=C alone would badly underfill the MXU K
            # dim, so stack the 9 taps along the sublane axis and run a single
            # K=9*C matmul per batch element.  f32 taps are (8,128)-tile
            # aligned so the concat is pure layout; the f32->bf16 cast touches
            # only ~9*C*HW elements here, negligible at small C (the "cast
            # taps early" VMEM concern only bites at large C, which takes the
            # accumulate path below and builds no im2col block at all).
            xcol = jnp.concatenate([tap(inp, i) for i in range(9)],
                                   axis=1).astype(jnp.bfloat16)
            return dot_batched(w, xcol)
        # Large C (real ResNet layers): K=C already fills the MXU, so cast each
        # tap to bf16 and accumulate nine K=C matmuls into an f32 result,
        # consuming one tap at a time (no 9x activation blow-up in VMEM).
        inp_bf = inp.astype(jnp.bfloat16)
        y = None
        for i in range(9):
            yi = dot_batched(w[:, i * C:(i + 1) * C], tap(inp_bf, i))
            y = yi if y is None else y + yi
        return y

    inv_n = 1.0 / float(B * HW)

    def bn_scale_bias(y, g_ref, b_ref):
        """One-pass training-mode BN (biased var), folded to per-channel scale/bias."""
        s = jnp.sum(y, axis=(0, 2), keepdims=True)            # (1, C, 1)
        sq = jnp.sum(y * y, axis=(0, 2), keepdims=True)       # (1, C, 1)
        mean = s * inv_n
        var = sq * inv_n - mean * mean                        # biased variance
        scale = g_ref[...] * jax.lax.rsqrt(var + EPS)
        bias = b_ref[...] - mean * scale
        return scale, bias

    y1 = conv3x3(x, w1_ref)
    s1, c1 = bn_scale_bias(y1, g1_ref, b1_ref)
    h1 = jnp.maximum(y1 * s1 + c1, 0.0)                       # bn1 + relu fused

    y2 = conv3x3(h1, w2_ref)
    s2, c2 = bn_scale_bias(y2, g2_ref, b2_ref)
    # downsample is None by default -> identity residual (stride=1, Ci == Co).
    o_ref[...] = jnp.maximum(y2 * s2 + c2 + x, 0.0).astype(o_ref.dtype)


# ---------------------------------------------------------------------------
# Wrapper: NCHW in / NCHW out (PyTorch convention), no HBM transposes.
# ---------------------------------------------------------------------------
def basic_block_forward(x_nchw, params):
    w1, g1, b1, w2, g2, b2 = params
    B, C, H, W = x_nchw.shape
    HW = H * W
    if W & (W - 1):
        # TODO(synk): general W needs lane-index div/mod or precomputed column
        # masks passed in; only power-of-two W is supported in-kernel here.
        raise NotImplementedError("width must be a power of two")

    # bf16 activations halve the HBM->VMEM input DMA; all accumulation and BN
    # statistics stay in f32 inside the kernel.
    x2 = x_nchw.reshape(B, C, HW).astype(jnp.bfloat16)        # free reshape

    def prep_w(w):  # (3,3,Ci,Co) HWIO -> (Co, 9*Ci) bf16 MXU operand
        co = w.shape[3]
        return jnp.transpose(w, (3, 0, 1, 2)).reshape(co, -1).astype(jnp.bfloat16)

    def prep_v(v):  # (C,) -> (1, C, 1) f32 (broadcasts over batch and lanes)
        return jnp.asarray(v, jnp.float32).reshape(1, C, 1)

    kernel = functools.partial(basic_block_kernel, height=H, width=W)

    flops = 2 * (2 * B * HW * (9 * C) * C)                    # two im2col matmuls
    bytes_accessed = B * C * HW * (2 + 4) + 2 * 9 * C * C * 2 + 4 * C * 4
    cost = pl.CostEstimate(flops=flops, transcendentals=2 * C,
                           bytes_accessed=bytes_accessed)

    # TODO(synk): real ResNet shapes need a (batch, row-tile-with-halo) grid
    # with double-buffered BlockSpecs (batch axis "parallel" so v7x's 2 TCs
    # both work) plus a separate BN stats/apply split, because training-mode BN
    # statistics are global over (N, H, W); tile sizes then get chosen per
    # generation (v7x ~half of v5e/v6e VMEM).  The tiny test block here runs as
    # a single VMEM-resident step instead.
    out2 = pl.pallas_call(
        kernel,
        out_shape=jax.ShapeDtypeStruct((B, C, HW), jnp.float32),
        in_specs=[pl.BlockSpec(memory_space=pltpu.MemorySpace.VMEM)] * 7,
        out_specs=pl.BlockSpec(memory_space=pltpu.MemorySpace.VMEM),
        compiler_params=pltpu.CompilerParams(vmem_limit_bytes=32 * 1024 * 1024),
        cost_estimate=cost,
    )(x2, prep_w(w1), prep_v(g1), prep_v(b1), prep_w(w2), prep_v(g2), prep_v(b2))

    return out2.reshape(B, C, H, W)                           # free reshape


# ---------------------------------------------------------------------------
# Pure-JAX reference (correctness check only)
# ---------------------------------------------------------------------------
def reference(x_nchw, params):
    w1, g1, b1, w2, g2, b2 = params

    def conv(x, w):  # w: (3,3,Ci,Co) HWIO
        return jax.lax.conv_general_dilated(
            x, w, window_strides=(1, 1), padding=((1, 1), (1, 1)),
            dimension_numbers=("NCHW", "HWIO", "NCHW"),
            precision=jax.lax.Precision.HIGHEST)

    def bn(y, g, b):
        mean = jnp.mean(y, axis=(0, 2, 3), keepdims=True)
        var = jnp.mean((y - mean) ** 2, axis=(0, 2, 3), keepdims=True)
        return ((y - mean) * jax.lax.rsqrt(var + EPS) * g.reshape(1, -1, 1, 1)
                + b.reshape(1, -1, 1, 1))

    out = jax.nn.relu(bn(conv(x_nchw, w1), g1, b1))
    out = bn(conv(out, w2), g2, b2)
    return jax.nn.relu(out + x_nchw)


if __name__ == "__main__":
    key = jax.random.PRNGKey(0)
    B, C, H, W = 2, 8, 16, 16          # in_planes == out_planes, stride=1
    ks = jax.random.split(key, 7)

    x = jax.random.normal(ks[0], (B, C, H, W), jnp.float32)
    fan_in = 9 * C                      # kaiming-style deterministic scale
    w1 = jax.random.normal(ks[1], (3, 3, C, C), jnp.float32) * (2.0 / fan_in) ** 0.5
    w2 = jax.random.normal(ks[2], (3, 3, C, C), jnp.float32) * (2.0 / fan_in) ** 0.5
    g1 = 1.0 + 0.1 * jax.random.normal(ks[3], (C,), jnp.float32)
    b1 = 0.1 * jax.random.normal(ks[4], (C,), jnp.float32)
    g2 = 1.0 + 0.1 * jax.random.normal(ks[5], (C,), jnp.float32)
    b2 = 0.1 * jax.random.normal(ks[6], (C,), jnp.float32)
    params = (w1, g1, b1, w2, g2, b2)

    out = jax.block_until_ready(basic_block_forward(x, params))
    ref = jax.block_until_ready(reference(x, params))
    # Tolerance accounts for bf16 activations / bf16 MXU operands (f32
    # accumulate) vs. the f32 HIGHEST-precision reference convolution.
    np.testing.assert_allclose(np.asarray(out), np.asarray(ref),
                               atol=5e-2, rtol=5e-2)
    print("KERNEL_OK")
</pallas_src>

<mosaic_0001>
module attributes {stable_mosaic.version = 11 : i64} {
  func.func @basic_block_kernel(%arg0: memref<2x8x256xbf16, #tpu.memory_space<vmem>>, %arg1: memref<8x72xbf16, #tpu.memory_space<vmem>>, %arg2: memref<1x8x1xf32, #tpu.memory_space<vmem>>, %arg3: memref<1x8x1xf32, #tpu.memory_space<vmem>>, %arg4: memref<8x72xbf16, #tpu.memory_space<vmem>>, %arg5: memref<1x8x1xf32, #tpu.memory_space<vmem>>, %arg6: memref<1x8x1xf32, #tpu.memory_space<vmem>>, %arg7: memref<2x8x256xf32, #tpu.memory_space<vmem>>) attributes {dimension_semantics = [], scalar_prefetch = 0 : i64, scratch_operands = 0 : i64, tpu.core_type = #tpu.core_type<tc>} {
    %c0 = arith.constant 0 : index
    %c0_0 = arith.constant 0 : index
    %c0_1 = arith.constant 0 : index
    %0 = vector.load %arg0[%c0, %c0_0, %c0_1] : memref<2x8x256xbf16, #tpu.memory_space<vmem>>, vector<2x8x256xbf16>
    %1 = arith.extf %0 : vector<2x8x256xbf16> to vector<2x8x256xf32>
    %2 = tpu.iota {dimensions = array<i32: 2>} : vector<1x1x256xi32>
    %c15_i32 = arith.constant 15 : i32
    %3 = vector.broadcast %c15_i32 : i32 to vector<1x1x256xi32>
    %4 = arith.andi %2, %3 : vector<1x1x256xi32>
    %c16_i32 = arith.constant 16 : i32
    %5 = vector.broadcast %c16_i32 : i32 to vector<1x1x256xi32>
    %6 = arith.cmpi sge, %2, %5 : vector<1x1x256xi32>
    %c1_i32 = arith.constant 1 : i32
    %7 = vector.broadcast %c1_i32 : i32 to vector<1x1x256xi32>
    %8 = arith.cmpi sge, %4, %7 : vector<1x1x256xi32>
    %9 = arith.andi %6, %8 : vector<1x1x256xi1>
    %c16_i32_2 = arith.constant 16 : i32
    %10 = vector.broadcast %c16_i32_2 : i32 to vector<1x1x256xi32>
    %11 = arith.cmpi sge, %2, %10 : vector<1x1x256xi32>
    %c16_i32_3 = arith.constant 16 : i32
    %12 = vector.broadcast %c16_i32_3 : i32 to vector<1x1x256xi32>
    %13 = arith.cmpi sge, %2, %12 : vector<1x1x256xi32>
    %c14_i32 = arith.constant 14 : i32
    %14 = vector.broadcast %c14_i32 : i32 to vector<1x1x256xi32>
    %15 = arith.cmpi sle, %4, %14 : vector<1x1x256xi32>
    %16 = arith.andi %13, %15 : vector<1x1x256xi1>
    %c1_i32_4 = arith.constant 1 : i32
    %17 = vector.broadcast %c1_i32_4 : i32 to vector<1x1x256xi32>
    %18 = arith.cmpi sge, %4, %17 : vector<1x1x256xi32>
    %c14_i32_5 = arith.constant 14 : i32
    %19 = vector.broadcast %c14_i32_5 : i32 to vector<1x1x256xi32>
    %20 = arith.cmpi sle, %4, %19 : vector<1x1x256xi32>
    %c240_i32 = arith.constant 240 : i32
    %21 = vector.broadcast %c240_i32 : i32 to vector<1x1x256xi32>
    %22 = arith.cmpi slt, %2, %21 : vector<1x1x256xi32>
    %c1_i32_6 = arith.constant 1 : i32
    %23 = vector.broadcast %c1_i32_6 : i32 to vector<1x1x256xi32>
    %24 = arith.cmpi sge, %4, %23 : vector<1x1x256xi32>
    %25 = arith.andi %22, %24 : vector<1x1x256xi1>
    %c240_i32_7 = arith.constant 240 : i32
    %26 = vector.broadcast %c240_i32_7 : i32 to vector<1x1x256xi32>
    %27 = arith.cmpi slt, %2, %26 : vector<1x1x256xi32>
    %c240_i32_8 = arith.constant 240 : i32
    %28 = vector.broadcast %c240_i32_8 : i32 to vector<1x1x256xi32>
    %29 = arith.cmpi slt, %2, %28 : vector<1x1x256xi32>
    %c14_i32_9 = arith.constant 14 : i32
    %30 = vector.broadcast %c14_i32_9 : i32 to vector<1x1x256xi32>
    %31 = arith.cmpi sle, %4, %30 : vector<1x1x256xi32>
    %32 = arith.andi %29, %31 : vector<1x1x256xi1>
    %c0_10 = arith.constant 0 : index
    %c0_11 = arith.constant 0 : index
    %33 = vector.load %arg1[%c0_10, %c0_11] : memref<8x72xbf16, #tpu.memory_space<vmem>>, vector<8x72xbf16>
    %c17_i32 = arith.constant 17 : i32
    %34 = tpu.dynamic_rotate %1 by %c17_i32 dim 2 : vector<2x8x256xf32>, i32 -> vector<2x8x256xf32>
    %cst = arith.constant 0.000000e+00 : f32
    %35 = vector.shape_cast %9 : vector<1x1x256xi1> to vector<1x1x256xi1>
    %36 = vector.broadcast %35 : vector<1x1x256xi1> to vector<2x8x256xi1>
    %37 = vector.broadcast %cst : f32 to vector<2x8x256xf32>
    %38 = arith.select %36, %34, %37 : vector<2x8x256xi1>, vector<2x8x256xf32>
    %c16_i32_12 = arith.constant 16 : i32
    %39 = tpu.dynamic_rotate %1 by %c16_i32_12 dim 2 : vector<2x8x256xf32>, i32 -> vector<2x8x256xf32>
    %cst_13 = arith.constant 0.000000e+00 : f32
    %40 = vector.shape_cast %11 : vector<1x1x256xi1> to vector<1x1x256xi1>
    %41 = vector.broadcast %40 : vector<1x1x256xi1> to vector<2x8x256xi1>
    %42 = vector.broadcast %cst_13 : f32 to vector<2x8x256xf32>
    %43 = arith.select %41, %39, %42 : vector<2x8x256xi1>, vector<2x8x256xf32>
    %c15_i32_14 = arith.constant 15 : i32
    %44 = tpu.dynamic_rotate %1 by %c15_i32_14 dim 2 : vector<2x8x256xf32>, i32 -> vector<2x8x256xf32>
    %cst_15 = arith.constant 0.000000e+00 : f32
    %45 = vector.shape_cast %16 : vector<1x1x256xi1> to vector<1x1x256xi1>
    %46 = vector.broadcast %45 : vector<1x1x256xi1> to vector<2x8x256xi1>
    %47 = vector.broadcast %cst_15 : f32 to vector<2x8x256xf32>
    %48 = arith.select %46, %44, %47 : vector<2x8x256xi1>, vector<2x8x256xf32>
    %c1_i32_16 = arith.constant 1 : i32
    %49 = tpu.dynamic_rotate %1 by %c1_i32_16 dim 2 : vector<2x8x256xf32>, i32 -> vector<2x8x256xf32>
    %cst_17 = arith.constant 0.000000e+00 : f32
    %50 = vector.shape_cast %18 : vector<1x1x256xi1> to vector<1x1x256xi1>
    %51 = vector.broadcast %50 : vector<1x1x256xi1> to vector<2x8x256xi1>
    %52 = vector.broadcast %cst_17 : f32 to vector<2x8x256xf32>
    %53 = arith.select %51, %49, %52 : vector<2x8x256xi1>, vector<2x8x256xf32>
    %c255_i32 = arith.constant 255 : i32
    %54 = tpu.dynamic_rotate %1 by %c255_i32 dim 2 : vector<2x8x256xf32>, i32 -> vector<2x8x256xf32>
    %cst_18 = arith.constant 0.000000e+00 : f32
    %55 = vector.shape_cast %20 : vector<1x1x256xi1> to vector<1x1x256xi1>
    %56 = vector.broadcast %55 : vector<1x1x256xi1> to vector<2x8x256xi1>
    %57 = vector.broadcast %cst_18 : f32 to vector<2x8x256xf32>
    %58 = arith.select %56, %54, %57 : vector<2x8x256xi1>, vector<2x8x256xf32>
    %c241_i32 = arith.constant 241 : i32
    %59 = tpu.dynamic_rotate %1 by %c241_i32 dim 2 : vector<2x8x256xf32>, i32 -> vector<2x8x256xf32>
    %cst_19 = arith.constant 0.000000e+00 : f32
    %60 = vector.shape_cast %25 : vector<1x1x256xi1> to vector<1x1x256xi1>
    %61 = vector.broadcast %60 : vector<1x1x256xi1> to vector<2x8x256xi1>
    %62 = vector.broadcast %cst_19 : f32 to vector<2x8x256xf32>
    %63 = arith.select %61, %59, %62 : vector<2x8x256xi1>, vector<2x8x256xf32>
    %c240_i32_20 = arith.constant 240 : i32
    %64 = tpu.dynamic_rotate %1 by %c240_i32_20 dim 2 : vector<2x8x256xf32>, i32 -> vector<2x8x256xf32>
    %cst_21 = arith.constant 0.000000e+00 : f32
    %65 = vector.shape_cast %27 : vector<1x1x256xi1> to vector<1x1x256xi1>
    %66 = vector.broadcast %65 : vector<1x1x256xi1> to vector<2x8x256xi1>
    %67 = vector.broadcast %cst_21 : f32 to vector<2x8x256xf32>
    %68 = arith.select %66, %64, %67 : vector<2x8x256xi1>, vector<2x8x256xf32>
    %c239_i32 = arith.constant 239 : i32
    %69 = tpu.dynamic_rotate %1 by %c239_i32 dim 2 : vector<2x8x256xf32>, i32 -> vector<2x8x256xf32>
    %cst_22 = arith.constant 0.000000e+00 : f32
    %70 = vector.shape_cast %32 : vector<1x1x256xi1> to vector<1x1x256xi1>
    %71 = vector.broadcast %70 : vector<1x1x256xi1> to vector<2x8x256xi1>
    %72 = vector.broadcast %cst_22 : f32 to vector<2x8x256xf32>
    %73 = arith.select %71, %69, %72 : vector<2x8x256xi1>, vector<2x8x256xf32>
    %74 = tpu.concatenate %38, %43, %48, %53, %1, %58, %63, %68, %73 in 1 : vector<2x8x256xf32>, vector<2x8x256xf32>, vector<2x8x256xf32>, vector<2x8x256xf32>, vector<2x8x256xf32>, vector<2x8x256xf32>, vector<2x8x256xf32>, vector<2x8x256xf32>, vector<2x8x256xf32> -> vector<2x72x256xf32>
    %75 = arith.truncf %74 : vector<2x72x256xf32> to vector<2x72x256xbf16>
    %76 = vector.extract_strided_slice %75 {offsets = [0, 0, 0], sizes = [1, 72, 256], strides = [1, 1, 1]} : vector<2x72x256xbf16> to vector<1x72x256xbf16>
    %77 = vector.shape_cast %76 : vector<1x72x256xbf16> to vector<72x256xbf16>
    %cst_23 = arith.constant dense<0.000000e+00> : vector<8x256xf32>
    %78 = tpu.matmul %33, %77, %cst_23 {dimension_numbers = #tpu.dot_dimension_numbers<[1], [0], [0], [1], [0, 0, 1, 1], [], []>} : vector<8x72xbf16>, vector<72x256xbf16>, vector<8x256xf32> -> vector<8x256xf32>
    %79 = vector.extract_strided_slice %75 {offsets = [1, 0, 0], sizes = [1, 72, 256], strides = [1, 1, 1]} : vector<2x72x256xbf16> to vector<1x72x256xbf16>
    %80 = vector.shape_cast %79 : vector<1x72x256xbf16> to vector<72x256xbf16>
    %cst_24 = arith.constant dense<0.000000e+00> : vector<8x256xf32>
    %81 = tpu.matmul %33, %80, %cst_24 {dimension_numbers = #tpu.dot_dimension_numbers<[1], [0], [0], [1], [0, 0, 1, 1], [], []>} : vector<8x72xbf16>, vector<72x256xbf16>, vector<8x256xf32> -> vector<8x256xf32>
    %82 = vector.shape_cast %78 : vector<8x256xf32> to vector<1x8x256xf32>
    %83 = vector.shape_cast %81 : vector<8x256xf32> to vector<1x8x256xf32>
    %84 = tpu.concatenate %82, %83 in 0 : vector<1x8x256xf32>, vector<1x8x256xf32> -> vector<2x8x256xf32>
    %cst_25 = arith.constant dense<0.000000e+00> : vector<8xf32>
    %85 = vector.multi_reduction <add>, %84, %cst_25 [0, 2] : vector<2x8x256xf32> to vector<8xf32>
    %86 = vector.shape_cast %85 : vector<8xf32> to vector<1x8x1xf32>
    %87 = arith.mulf %84, %84 : vector<2x8x256xf32>
    %cst_26 = arith.constant dense<0.000000e+00> : vector<8xf32>
    %88 = vector.multi_reduction <add>, %87, %cst_26 [0, 2] : vector<2x8x256xf32> to vector<8xf32>
    %89 = vector.shape_cast %88 : vector<8xf32> to vector<1x8x1xf32>
    %cst_27 = arith.constant 0.001953125 : f32
    %90 = vector.broadcast %cst_27 : f32 to vector<1x8x1xf32>
    %91 = arith.mulf %86, %90 : vector<1x8x1xf32>
    %cst_28 = arith.constant 0.001953125 : f32
    %92 = vector.broadcast %cst_28 : f32 to vector<1x8x1xf32>
    %93 = arith.mulf %89, %92 : vector<1x8x1xf32>
    %94 = arith.mulf %91, %91 : vector<1x8x1xf32>
    %95 = arith.subf %93, %94 : vector<1x8x1xf32>
    %c0_29 = arith.constant 0 : index
    %c0_30 = arith.constant 0 : index
    %c0_31 = arith.constant 0 : index
    %96 = vector.load %arg2[%c0_29, %c0_30, %c0_31] : memref<1x8x1xf32, #tpu.memory_space<vmem>>, vector<1x8x1xf32>
    %cst_32 = arith.constant 9.99999974E-6 : f32
    %97 = vector.broadcast %cst_32 : f32 to vector<1x8x1xf32>
    %98 = arith.addf %95, %97 : vector<1x8x1xf32>
    %99 = math.rsqrt %98 : vector<1x8x1xf32>
    %100 = arith.mulf %96, %99 : vector<1x8x1xf32>
    %c0_33 = arith.constant 0 : index
    %c0_34 = arith.constant 0 : index
    %c0_35 = arith.constant 0 : index
    %101 = vector.load %arg3[%c0_33, %c0_34, %c0_35] : memref<1x8x1xf32, #tpu.memory_space<vmem>>, vector<1x8x1xf32>
    %102 = arith.mulf %91, %100 : vector<1x8x1xf32>
    %103 = arith.subf %101, %102 : vector<1x8x1xf32>
    %104 = vector.broadcast %100 : vector<1x8x1xf32> to vector<2x8x256xf32>
    %105 = arith.mulf %84, %104 : vector<2x8x256xf32>
    %106 = vector.broadcast %103 : vector<1x8x1xf32> to vector<2x8x256xf32>
    %107 = arith.addf %105, %106 : vector<2x8x256xf32>
    %cst_36 = arith.constant 0.000000e+00 : f32
    %108 = vector.broadcast %cst_36 : f32 to vector<2x8x256xf32>
    %109 = arith.maximumf %107, %108 : vector<2x8x256xf32>
    %c0_37 = arith.constant 0 : index
    %c0_38 = arith.constant 0 : index
    %110 = vector.load %arg4[%c0_37, %c0_38] : memref<8x72xbf16, #tpu.memory_space<vmem>>, vector<8x72xbf16>
    %c17_i32_39 = arith.constant 17 : i32
    %111 = tpu.dynamic_rotate %109 by %c17_i32_39 dim 2 : vector<2x8x256xf32>, i32 -> vector<2x8x256xf32>
    %cst_40 = arith.constant 0.000000e+00 : f32
    %112 = vector.shape_cast %9 : vector<1x1x256xi1> to vector<1x1x256xi1>
    %113 = vector.broadcast %112 : vector<1x1x256xi1> to vector<2x8x256xi1>
    %114 = vector.broadcast %cst_40 : f32 to vector<2x8x256xf32>
    %115 = arith.select %113, %111, %114 : vector<2x8x256xi1>, vector<2x8x256xf32>
    %c16_i32_41 = arith.constant 16 : i32
    %116 = tpu.dynamic_rotate %109 by %c16_i32_41 dim 2 : vector<2x8x256xf32>, i32 -> vector<2x8x256xf32>
    %cst_42 = arith.constant 0.000000e+00 : f32
    %117 = vector.shape_cast %11 : vector<1x1x256xi1> to vector<1x1x256xi1>
    %118 = vector.broadcast %117 : vector<1x1x256xi1> to vector<2x8x256xi1>
    %119 = vector.broadcast %cst_42 : f32 to vector<2x8x256xf32>
    %120 = arith.select %118, %116, %119 : vector<2x8x256xi1>, vector<2x8x256xf32>
    %c15_i32_43 = arith.constant 15 : i32
    %121 = tpu.dynamic_rotate %109 by %c15_i32_43 dim 2 : vector<2x8x256xf32>, i32 -> vector<2x8x256xf32>
    %cst_44 = arith.constant 0.000000e+00 : f32
    %122 = vector.shape_cast %16 : vector<1x1x256xi1> to vector<1x1x256xi1>
    %123 = vector.broadcast %122 : vector<1x1x256xi1> to vector<2x8x256xi1>
    %124 = vector.broadcast %cst_44 : f32 to vector<2x8x256xf32>
    %125 = arith.select %123, %121, %124 : vector<2x8x256xi1>, vector<2x8x256xf32>
    %c1_i32_45 = arith.constant 1 : i32
    %126 = tpu.dynamic_rotate %109 by %c1_i32_45 dim 2 : vector<2x8x256xf32>, i32 -> vector<2x8x256xf32>
    %cst_46 = arith.constant 0.000000e+00 : f32
    %127 = vector.shape_cast %18 : vector<1x1x256xi1> to vector<1x1x256xi1>
    %128 = vector.broadcast %127 : vector<1x1x256xi1> to vector<2x8x256xi1>
    %129 = vector.broadcast %cst_46 : f32 to vector<2x8x256xf32>
    %130 = arith.select %128, %126, %129 : vector<2x8x256xi1>, vector<2x8x256xf32>
    %c255_i32_47 = arith.constant 255 : i32
    %131 = tpu.dynamic_rotate %109 by %c255_i32_47 dim 2 : vector<2x8x256xf32>, i32 -> vector<2x8x256xf32>
    %cst_48 = arith.constant 0.000000e+00 : f32
    %132 = vector.shape_cast %20 : vector<1x1x256xi1> to vector<1x1x256xi1>
    %133 = vector.broadcast %132 : vector<1x1x256xi1> to vector<2x8x256xi1>
    %134 = vector.broadcast %cst_48 : f32 to vector<2x8x256xf32>
    %135 = arith.select %133, %131, %134 : vector<2x8x256xi1>, vector<2x8x256xf32>
    %c241_i32_49 = arith.constant 241 : i32
    %136 = tpu.dynamic_rotate %109 by %c241_i32_49 dim 2 : vector<2x8x256xf32>, i32 -> vector<2x8x256xf32>
    %cst_50 = arith.constant 0.000000e+00 : f32
    %137 = vector.shape_cast %25 : vector<1x1x256xi1> to vector<1x1x256xi1>
    %138 = vector.broadcast %137 : vector<1x1x256xi1> to vector<2x8x256xi1>
    %139 = vector.broadcast %cst_50 : f32 to vector<2x8x256xf32>
    %140 = arith.select %138, %136, %139 : vector<2x8x256xi1>, vector<2x8x256xf32>
    %c240_i32_51 = arith.constant 240 : i32
    %141 = tpu.dynamic_rotate %109 by %c240_i32_51 dim 2 : vector<2x8x256xf32>, i32 -> vector<2x8x256xf32>
    %cst_52 = arith.constant 0.000000e+00 : f32
    %142 = vector.shape_cast %27 : vector<1x1x256xi1> to vector<1x1x256xi1>
    %143 = vector.broadcast %142 : vector<1x1x256xi1> to vector<2x8x256xi1>
    %144 = vector.broadcast %cst_52 : f32 to vector<2x8x256xf32>
    %145 = arith.select %143, %141, %144 : vector<2x8x256xi1>, vector<2x8x256xf32>
    %c239_i32_53 = arith.constant 239 : i32
    %146 = tpu.dynamic_rotate %109 by %c239_i32_53 dim 2 : vector<2x8x256xf32>, i32 -> vector<2x8x256xf32>
    %cst_54 = arith.constant 0.000000e+00 : f32
    %147 = vector.shape_cast %32 : vector<1x1x256xi1> to vector<1x1x256xi1>
    %148 = vector.broadcast %147 : vector<1x1x256xi1> to vector<2x8x256xi1>
    %149 = vector.broadcast %cst_54 : f32 to vector<2x8x256xf32>
    %150 = arith.select %148, %146, %149 : vector<2x8x256xi1>, vector<2x8x256xf32>
    %151 = tpu.concatenate %115, %120, %125, %130, %109, %135, %140, %145, %150 in 1 : vector<2x8x256xf32>, vector<2x8x256xf32>, vector<2x8x256xf32>, vector<2x8x256xf32>, vector<2x8x256xf32>, vector<2x8x256xf32>, vector<2x8x256xf32>, vector<2x8x256xf32>, vector<2x8x256xf32> -> vector<2x72x256xf32>
    %152 = arith.truncf %151 : vector<2x72x256xf32> to vector<2x72x256xbf16>
    %153 = vector.extract_strided_slice %152 {offsets = [0, 0, 0], sizes = [1, 72, 256], strides = [1, 1, 1]} : vector<2x72x256xbf16> to vector<1x72x256xbf16>
    %154 = vector.shape_cast %153 : vector<1x72x256xbf16> to vector<72x256xbf16>
    %cst_55 = arith.constant dense<0.000000e+00> : vector<8x256xf32>
    %155 = tpu.matmul %110, %154, %cst_55 {dimension_numbers = #tpu.dot_dimension_numbers<[1], [0], [0], [1], [0, 0, 1, 1], [], []>} : vector<8x72xbf16>, vector<72x256xbf16>, vector<8x256xf32> -> vector<8x256xf32>
    %156 = vector.extract_strided_slice %152 {offsets = [1, 0, 0], sizes = [1, 72, 256], strides = [1, 1, 1]} : vector<2x72x256xbf16> to vector<1x72x256xbf16>
    %157 = vector.shape_cast %156 : vector<1x72x256xbf16> to vector<72x256xbf16>
    %cst_56 = arith.constant dense<0.000000e+00> : vector<8x256xf32>
    %158 = tpu.matmul %110, %157, %cst_56 {dimension_numbers = #tpu.dot_dimension_numbers<[1], [0], [0], [1], [0, 0, 1, 1], [], []>} : vector<8x72xbf16>, vector<72x256xbf16>, vector<8x256xf32> -> vector<8x256xf32>
    %159 = vector.shape_cast %155 : vector<8x256xf32> to vector<1x8x256xf32>
    %160 = vector.shape_cast %158 : vector<8x256xf32> to vector<1x8x256xf32>
    %161 = tpu.concatenate %159, %160 in 0 : vector<1x8x256xf32>, vector<1x8x256xf32> -> vector<2x8x256xf32>
    %cst_57 = arith.constant dense<0.000000e+00> : vector<8xf32>
    %162 = vector.multi_reduction <add>, %161, %cst_57 [0, 2] : vector<2x8x256xf32> to vector<8xf32>
    %163 = vector.shape_cast %162 : vector<8xf32> to vector<1x8x1xf32>
    %164 = arith.mulf %161, %161 : vector<2x8x256xf32>
    %cst_58 = arith.constant dense<0.000000e+00> : vector<8xf32>
    %165 = vector.multi_reduction <add>, %164, %cst_58 [0, 2] : vector<2x8x256xf32> to vector<8xf32>
    %166 = vector.shape_cast %165 : vector<8xf32> to vector<1x8x1xf32>
    %cst_59 = arith.constant 0.001953125 : f32
    %167 = vector.broadcast %cst_59 : f32 to vector<1x8x1xf32>
    %168 = arith.mulf %163, %167 : vector<1x8x1xf32>
    %cst_60 = arith.constant 0.001953125 : f32
    %169 = vector.broadcast %cst_60 : f32 to vector<1x8x1xf32>
    %170 = arith.mulf %166, %169 : vector<1x8x1xf32>
    %171 = arith.mulf %168, %168 : vector<1x8x1xf32>
    %172 = arith.subf %170, %171 : vector<1x8x1xf32>
    %c0_61 = arith.constant 0 : index
    %c0_62 = arith.constant 0 : index
    %c0_63 = arith.constant 0 : index
    %173 = vector.load %arg5[%c0_61, %c0_62, %c0_63] : memref<1x8x1xf32, #tpu.memory_space<vmem>>, vector<1x8x1xf32>
    %cst_64 = arith.constant 9.99999974E-6 : f32
    %174 = vector.broadcast %cst_64 : f32 to vector<1x8x1xf32>
    %175 = arith.addf %172, %174 : vector<1x8x1xf32>
    %176 = math.rsqrt %175 : vector<1x8x1xf32>
    %177 = arith.mulf %173, %176 : vector<1x8x1xf32>
    %c0_65 = arith.constant 0 : index
    %c0_66 = arith.constant 0 : index
    %c0_67 = arith.constant 0 : index
    %178 = vector.load %arg6[%c0_65, %c0_66, %c0_67] : memref<1x8x1xf32, #tpu.memory_space<vmem>>, vector<1x8x1xf32>
    %179 = arith.mulf %168, %177 : vector<1x8x1xf32>
    %180 = arith.subf %178, %179 : vector<1x8x1xf32>
    %181 = vector.broadcast %177 : vector<1x8x1xf32> to vector<2x8x256xf32>
    %182 = arith.mulf %161, %181 : vector<2x8x256xf32>
    %183 = vector.broadcast %180 : vector<1x8x1xf32> to vector<2x8x256xf32>
    %184 = arith.addf %182, %183 : vector<2x8x256xf32>
    %185 = arith.addf %184, %1 : vector<2x8x256xf32>
    %cst_68 = arith.constant 0.000000e+00 : f32
    %186 = vector.broadcast %cst_68 : f32 to vector<2x8x256xf32>
    %187 = arith.maximumf %185, %186 : vector<2x8x256xf32>
    %c0_69 = arith.constant 0 : index
    %c0_70 = arith.constant 0 : index
    %c0_71 = arith.constant 0 : index
    %188 = vector.load %arg7[%c0_69, %c0_70, %c0_71] : memref<2x8x256xf32, #tpu.memory_space<vmem>>, vector<2x8x256xf32>
    tpu.vector_store %arg7[%c0_69, %c0_70, %c0_71], %187 {strides = array<i32>} : memref<2x8x256xf32, #tpu.memory_space<vmem>>, vector<2x8x256xf32>,
    return
  }
}

</mosaic_0001>

<bundles_post_ra>
// kernel: tpu_custom_call.1
= control target key start
LH: loop header
LB: loop body
LE: loop exit
PB: predicated region body
PF: predicated region fallthrough
CT: control target
= control target key end

     0   :  { %s1503_s0 = inlined_call_operand.vmem [shape: bf16[2,8,256], index: 0, kind: input, shape index: {}]   ;;  %s1504_s1 = inlined_call_operand.vmem [shape: bf16[8,72], index: 1, kind: input, shape index: {}]   ;;  %s1505_s2 = inlined_call_operand.vmem [shape: f32[1,8,1], index: 2, kind: input, shape index: {}]   ;;  %s1506_s3 = inlined_call_operand.vmem [shape: f32[1,8,1], index: 3, kind: input, shape index: {}]   ;;  %s1507_s4 = inlined_call_operand.vmem [shape: bf16[8,72], index: 4, kind: input, shape index: {}]   ;;  %s1508_s5 = inlined_call_operand.vmem [shape: f32[1,8,1], index: 5, kind: input, shape index: {}]   ;;  %s1509_s6 = inlined_call_operand.vmem [shape: f32[1,8,1], index: 6, kind: input, shape index: {}]   ;;  %s1510_s7 = inlined_call_operand.hbm [shape: f32[2,8,256], index: 7, kind: output, shape index: {}]  }
   0x1   :  { %v28_v0 = vld [vmem:[%s1503_s0] sm:$0xff]  ;;  %v29_v1 = vld [vmem:[%s1503_s0 + $0x8] sm:$0xff] }
   0x2   :  { %v1069_v2 = vunpack.c.l.bf16 %v28_v0  ;;  %v1071_v3 = vunpack.c.h.bf16 %v28_v0  ;;  %v1073_v4 = vunpack.c.l.bf16 %v29_v1  ;;  %v1075_v5 = vunpack.c.h.bf16 %v29_v1 }
   0x3   :  { %12 = vsyncpa [#allocation3], 0  ;;  %s1011_s28 = smov 113   ;;  %s1012_s29 = smov 111   ;;  %v1017_v8 = vmov 0   ;;  %v34_v9 = vlaneseq  ;;  %vm1512_vm6 = vcmask 1043456  }
   0x4   :  { %v833_v6 = vpack.i.bf16 %v1071_v3, %v1069_v2  ;;  %v828_v7 = vpack.i.bf16 %v1075_v5, %v1073_v4  ;;  %s1013_s0 = smov 112   ;;  %s1014_s30 = smov 127   ;;  %287 = vmatprep.mubr.bf16.mxu0 %v1017_v8  ;;  %334 = vmatprep.mubr.bf16.mxu1 %v1017_v8  ;;  %vm1515_vm13 = vmmov 1  }
   0x5   :  { %s1015_s8 = smov 15   ;;  %s1016_s9 = smov 1   ;;  %903 = vset.pattern.permute.xlu0 %v1017_v8  ;;  %904 = vset.pattern.permute.xlu1 %v1017_v8  ;;  %v1101_v10 = vand.u32 127, %v34_v9 }
   0x6   :  { %834 = vrot.lane.b32.xlu1 %v833_v6, %s1011_s28  ;;  %824 = vrot.lane.b32.xlu0 %v833_v6, %s1012_s29  ;;  %s1018_s10 = smov 16   ;;  %s1019_s11 = smov 17  }
   0x7   :  { %v36_v11 = vadd.s32 128, %v1101_v10  ;;  %v37_v13 = vand.u32 15, %v1101_v10  ;;  %vm1511_vm2 = vcmp.lt.s32.totalorder %v1101_v10, 111  ;;  %vm1513_vm7 = vcmp.lt.s32.totalorder %v1101_v10, 113 }
   0x8   :  { %vm1514_vm8 = vcmp.lt.s32.totalorder %v1101_v10, 112  ;;  %vm1517_vm10 = vcmp.lt.s32.totalorder %v1101_v10, 127 }
   0x9   :  { %v38_v12 = vand.u32 15, %v36_v11  ;;  %vm50_vm1 = vcmp.lt.s32.totalorder %v36_v11, 240  ;;  %vm1117_vm4 = vcmp.le.s32.totalorder %v37_v13, 14  ;;  %vm1139_vm11 = vcmp.ge.s32.totalorder %v37_v13, 1 }
   0xa   :  { %839 = vrot.lane.b32.xlu1 %v833_v6, %s1013_s0  ;;  %829 = vrot.lane.b32.xlu0 %v828_v7, %s1012_s29  ;;  %vm1169_vm14 = vmpackc.low %vm1515_vm13, %vm1139_vm11 }
   0xb   :  { %vm1105_vm0 = vcmp.le.s32.totalorder %v38_v12, 14  ;;  %vm1121_vm5 = vcmp.ge.s32.totalorder %v38_v12, 1 }
   0xc   :  { %vm1113_vm3 = vmand %vm50_vm1, %vm1105_vm0 }
   0xd   :  { %vm52_vm9 = vmand %vm50_vm1, %vm1121_vm5 }
   0xe   :  { %849 = vrot.lane.b32.xlu1 %v828_v7, %s1011_s28  ;;  %844 = vrot.lane.b32.xlu0 %v833_v6, %s1014_s30  ;;  %vm1148_vm12 = vmpackc.low %vm50_vm1, %vm52_vm9  ;;  %vm1516_vm1 = vcmp.lt.s32.totalorder %v1101_v10, 15  ;;  %vm39_vm9 = vcmp.ge.s32.totalorder %v1101_v10, 16 }
   0xf   :  { %vm1180_vm15 = vmpackc.low %vm1105_vm0, %vm1515_vm13 }
  0x12   :  { %859 = vrot.lane.b32.xlu1 %v833_v6, %s1015_s8  ;;  %854 = vrot.lane.b32.xlu0 %v828_v7, %s1013_s0 }
  0x16   :  { %869 = vrot.lane.b32.xlu1 %v828_v7, %s1014_s30  ;;  %864 = vrot.lane.b32.xlu0 %v833_v6, %s1016_s9 }
  0x1a   :  { %879 = vrot.lane.b32.xlu1 %v833_v6, %s1018_s10  ;;  %874 = vrot.lane.b32.xlu0 %v833_v6, %s1019_s11 }
  0x1e   :  { %889 = vrot.lane.b32.xlu1 %v828_v7, %s1016_s9  ;;  %884 = vrot.lane.b32.xlu0 %v828_v7, %s1015_s8 }
  0x22   :  { %899 = vrot.lane.b32.xlu1 %v828_v7, %s1018_s10  ;;  %894 = vrot.lane.b32.xlu0 %v828_v7, %s1019_s11 }
  0x78   :  { %v835_v15 = vpop.permute.xlu1 %834  ;;  %v825_v16 = vpop.permute.xlu0 %824 }
  0x79   :  { %v827_v17 = vunpack.i.h.bf16 %v825_v16  ;;  %v826_v18 = vunpack.i.l.bf16 %v825_v16  ;;  %v837_v22 = vunpack.i.h.bf16 %v835_v15  ;;  %v836_v23 = vunpack.i.l.bf16 %v835_v15 }
  0x7b   :  { %v214_v24 = vsel %vm1511_vm2, %v827_v17, %v826_v18  ;;  %v212_v25 = vsel %vm1511_vm2, %v826_v18, %v827_v17  ;;  %v172_v37 = vsel %vm1513_vm7, %v837_v22, %v836_v23  ;;  %v170_v48 = vsel %vm1513_vm7, %v836_v23, %v837_v22 }
  0x7c   :  { %v840_v26 = vpop.permute.xlu1 %839  ;;  %v830_v27 = vpop.permute.xlu0 %829  ;;  %v221_v28 = vsel %vm1113_vm3, %v214_v24, 0.0  ;;  %v220_v29 = vsel %vm1117_vm4, %v212_v25, 0.0 }
  0x7d   :  { %v842_v30 = vunpack.i.h.bf16 %v840_v26  ;;  %v841_v31 = vunpack.i.l.bf16 %v840_v26  ;;  %v832_v32 = vunpack.i.h.bf16 %v830_v27  ;;  %v831_v33 = vunpack.i.l.bf16 %v830_v27 }
  0x7e   :  { %v233_v34 = vpack.c.bf16 %v221_v28, %v221_v28  ;;  %v232_v35 = vpack.c.bf16 %v220_v29, %v220_v29 }
  0x7f   :  { %v193_v38 = vsel %vm1514_vm8, %v842_v30, %v841_v31  ;;  %v215_v40 = vsel %vm1511_vm2, %v832_v32, %v831_v33  ;;  %v213_v41 = vsel %vm1511_vm2, %v831_v33, %v832_v32  ;;  %v191_v42 = vsel %vm1514_vm8, %v841_v31, %v842_v30  ;;  %vm1200_vm2 = vmpackc.low %vm1117_vm4, %vm1515_vm13 }
  0x80   :  { %v709_v43 = vpack.c.bf16 %v193_v38, %v172_v37  ;;  %707 = vmatprep.subr.msk.bf16.mxu0 %vm1512_vm6, %v233_v34  ;;  %v850_v44 = vpop.permute.xlu1 %849  ;;  %v845_v45 = vpop.permute.xlu0 %844  ;;  %v250_v46 = vsel %vm1512_vm6, %v232_v35, 0  ;;  %v223_v47 = vsel %vm1113_vm3, %v215_v40, 0.0  ;;  %v222_v55 = vsel %vm1117_vm4, %v213_v41, 0.0 }
  0x81   :  { %v847_v49 = vunpack.i.h.bf16 %v845_v45  ;;  %v846_v50 = vunpack.i.l.bf16 %v845_v45  ;;  %262 = vmatpush1.bf16.msra.mxu0 %v250_v46  ;;  %v852_v51 = vunpack.i.h.bf16 %v850_v44  ;;  %v851_v52 = vunpack.i.l.bf16 %v850_v44 }
  0x82   :  { %710 = vmatprep.subr.msk.bf16.mxu0 %vm1148_vm12, %v709_v43  ;;  %v243_v53 = vpack.c.bf16 %v223_v47, %v223_v47  ;;  %v712_v56 = vpack.c.bf16 %v191_v42, %v170_v48  ;;  %v242_v63 = vpack.c.bf16 %v222_v55, %v222_v55  ;;  %vm1518_vm13 = vcmp.lt.s32.totalorder %v1101_v10, 17 }
  0x83   :  { %v151_v57 = vsel %vm1517_vm10, %v847_v49, %v846_v50  ;;  %v149_v59 = vsel %vm1517_vm10, %v846_v50, %v847_v49  ;;  %v171_v6 = vsel %vm1513_vm7, %v851_v52, %v852_v51  ;;  %v173_v13 = vsel %vm1513_vm7, %v852_v51, %v851_v52  ;;  %vm1218_vm7 = vmand %vm39_vm9, %vm1117_vm4 }
  0x84   :  { %v715_v60 = vpack.c.bf16 %v151_v57, %v1071_v3  ;;  %733 = vmatprep.subr.msk.bf16.mxu1 %vm1512_vm6, %v243_v53  ;;  %v860_v61 = vpop.permute.xlu1 %859  ;;  %v855_v62 = vpop.permute.xlu0 %854  ;;  %v297_v11 = vsel %vm1512_vm6, %v242_v63, 0  ;;  %v718_v15 = vpack.c.bf16 %v149_v59, %v1069_v2  ;;  %vm127_vm6 = vcmp.lt.s32.totalorder %v1101_v10, 1 }
  0x85   :  { %v857_v0 = vunpack.i.h.bf16 %v855_v62  ;;  %v856_v1 = vunpack.i.l.bf16 %v855_v62  ;;  %713 = vmatpush1.bf16.msk.msra.mxu0 %vm1169_vm14, %v712_v56  ;;  %v862_v7 = vunpack.i.h.bf16 %v860_v61  ;;  %v861_v9 = vunpack.i.l.bf16 %v860_v61  ;;  %309 = vmatpush1.bf16.msra.mxu1 %v297_v11 }
  0x86   :  { %716 = vmatprep.subr.msk.bf16.mxu0 %vm1180_vm15, %v715_v60 }
  0x87   :  { %v192_v16 = vsel %vm1514_vm8, %v856_v1, %v857_v0  ;;  %v194_v17 = vsel %vm1514_vm8, %v857_v0, %v856_v1  ;;  %v107_v30 = vsel %vm1516_vm1, %v861_v9, %v862_v7  ;;  %v109_v31 = vsel %vm1516_vm1, %v862_v7, %v861_v9  ;;  %vm1244_vm1 = vmpackc.low %vm1121_vm5, %vm1105_vm0  ;;  %v55_v7 = vld [vmem:[%s1504_s1] sm:$0xf] }
  0x88   :  { %v735_v18 = vpack.c.bf16 %v194_v17, %v173_v13  ;;  %v738_v22 = vpack.c.bf16 %v192_v16, %v171_v6  ;;  %v870_v23 = vpop.permute.xlu1 %869  ;;  %v865_v24 = vpop.permute.xlu0 %864  ;;  %vm85_vm8 = vcmp.lt.s32.totalorder %v1101_v10, 16  ;;  %vm43_vm0 = vmand %vm39_vm9, %vm1139_vm11 }
  0x89   :  { %v872_v25 = vunpack.i.h.bf16 %v870_v23  ;;  %v871_v26 = vunpack.i.l.bf16 %v870_v23  ;;  %v867_v27 = vunpack.i.h.bf16 %v865_v24  ;;  %v866_v28 = vunpack.i.l.bf16 %v865_v24  ;;  %719 = vmatpush1.bf16.msk.msra.mxu0 %vm1200_vm2, %v718_v15 }
  0x8a   :  { %736 = vmatprep.subr.msk.bf16.mxu1 %vm1148_vm12, %v735_v18 }
  0x8b   :  { %v150_v32 = vsel %vm1517_vm10, %v871_v26, %v872_v25  ;;  %v152_v33 = vsel %vm1517_vm10, %v872_v25, %v871_v26  ;;  %v128_v34 = vsel %vm127_vm6, %v866_v28, %v867_v27  ;;  %v130_v35 = vsel %vm127_vm6, %v867_v27, %v866_v28  ;;  %739 = vmatpush1.bf16.msk.msra.mxu1 %vm1169_vm14, %v738_v22  ;;  %vm1254_vm10 = vmpackc.low %vm1139_vm11, %vm1218_vm7 }
  0x8c   :  { %v741_v38 = vpack.c.bf16 %v152_v33, %v1075_v5  ;;  %v744_v40 = vpack.c.bf16 %v150_v32, %v1073_v4  ;;  %v721_v41 = vpack.c.bf16 %v128_v34, %v107_v30  ;;  %v724_v42 = vpack.c.bf16 %v130_v35, %v109_v31  ;;  %v880_v43 = vpop.permute.xlu1 %879  ;;  %v875_v44 = vpop.permute.xlu0 %874 }
  0x8d   :  { %v882_v45 = vunpack.i.h.bf16 %v880_v43  ;;  %v881_v46 = vunpack.i.l.bf16 %v880_v43  ;;  %v877_v47 = vunpack.i.h.bf16 %v875_v44  ;;  %v876_v48 = vunpack.i.l.bf16 %v875_v44 }
  0x8e   :  { %722 = vmatprep.subr.msk.bf16.mxu0 %vm1244_vm1, %v721_v41  ;;  %742 = vmatprep.subr.msk.bf16.mxu1 %vm1180_vm15, %v741_v38  ;;  %vm1544_vm7 = vmmov 1  }
  0x8f   :  { %v86_v49 = vsel %vm85_vm8, %v881_v46, %v882_v45  ;;  %v88_v50 = vsel %vm85_vm8, %v882_v45, %v881_v46  ;;  %v65_v51 = vsel %vm1518_vm13, %v876_v48, %v877_v47  ;;  %v67_v36 = vsel %vm1518_vm13, %v877_v47, %v876_v48  ;;  %725 = vmatpush1.bf16.msk.msra.mxu0 %vm1254_vm10, %v724_v42  ;;  %vm1279_vm11 = vmpackc.low %vm1544_vm7, %vm1121_vm5 }
  0x90   :  { %v727_v53 = vpack.c.bf16 %v86_v49, %v65_v51  ;;  %v730_v55 = vpack.c.bf16 %v88_v50, %v67_v36  ;;  %745 = vmatpush1.bf16.msk.msra.mxu1 %vm1200_vm2, %v744_v40  ;;  %v890_v56 = vpop.permute.xlu1 %889  ;;  %v885_v57 = vpop.permute.xlu0 %884  ;;  %vm1287_vm13 = vmpackc.low %vm39_vm9, %vm43_vm0  ;;  %vm1519_vm5 = vcmask 588800   ;;  %vm1549_vm7 = vcmp.lt.s32.totalorder %v1101_v10, 15 }
  0x91   :  { %v892_v60 = vunpack.i.h.bf16 %v890_v56  ;;  %v891_v21 = vunpack.i.l.bf16 %v890_v56  ;;  %v887_v61 = vunpack.i.h.bf16 %v885_v57  ;;  %v886_v62 = vunpack.i.l.bf16 %v885_v57  ;;  %vm1550_vm9 = vmmov %vm1549_vm7  ;;  %v361_v57 = vld [vmem:[%s1505_s2] sm:$0xff] }
  0x92   :  { %728 = vmatprep.subr.msk.bf16.mxu0 %vm1279_vm11, %v727_v53  ;;  %vm1551_vm0 = vcmp.lt.s32.totalorder %v1101_v10, 17 }
  0x93   :  { %v129_v63 = vsel %vm127_vm6, %v891_v21, %v892_v60  ;;  %v131_v0 = vsel %vm127_vm6, %v892_v60, %v891_v21  ;;  %v108_v1 = vsel %vm1549_vm7, %v886_v62, %v887_v61  ;;  %v110_v6 = vsel %vm1550_vm9, %v887_v61, %v886_v62  ;;  %731 = vmatpush1.bf16.msk.msra.mxu0 %vm1287_vm13, %v730_v55  ;;  %vm1552_vm7 = vmmov %vm1551_vm0  ;;  %v365_v61 = vld [vmem:[%s1506_s3] sm:$0xff] }
  0x94   :  { %v747_v9 = vpack.c.bf16 %v129_v63, %v108_v1  ;;  %v750_v11 = vpack.c.bf16 %v131_v0, %v110_v6  ;;  %v900_v13 = vpop.permute.xlu1 %899  ;;  %v895_v15 = vpop.permute.xlu0 %894  ;;  %vm1553_vm9 = vcmp.lt.s32.totalorder %v1101_v10, 111 }
  0x95   :  { %v902_v16 = vunpack.i.h.bf16 %v900_v13  ;;  %v901_v17 = vunpack.i.l.bf16 %v900_v13  ;;  %v897_v18 = vunpack.i.h.bf16 %v895_v15  ;;  %v896_v22 = vunpack.i.l.bf16 %v895_v15 }
  0x96   :  { %732 = vmatmul.mubr.msk.bf16.vlgmr.msra.gmra.mxu0 %vm1519_vm5, %v55_v7  ;;  %748 = vmatprep.subr.msk.bf16.mxu1 %vm1244_vm1, %v747_v9 }
  0x97   :  { %v87_v23 = vsel %vm85_vm8, %v901_v17, %v902_v16  ;;  %v89_v24 = vsel %vm85_vm8, %v902_v16, %v901_v17  ;;  %v66_v25 = vsel %vm1551_vm0, %v896_v22, %v897_v18  ;;  %v68_v26 = vsel %vm1552_vm7, %v897_v18, %v896_v22  ;;  %751 = vmatpush1.bf16.msk.msra.mxu1 %vm1254_vm10, %v750_v11  ;;  %vm1554_vm0 = vmmov %vm1553_vm9 }
  0x98   :  { %v753_v27 = vpack.c.bf16 %v87_v23, %v66_v25  ;;  %v756_v28 = vpack.c.bf16 %v89_v24, %v68_v26  ;;  %580 = vmatprep.mubr.bf16.mxu0 %v1017_v8  ;;  %vm1555_vm7 = vmmov %vm1554_vm0 }
  0x9a   :  { %754 = vmatprep.subr.msk.bf16.mxu1 %vm1279_vm11, %v753_v27 }
  0x9b   :  { %757 = vmatpush1.bf16.msk.msra.mxu1 %vm1287_vm13, %v756_v28 }
  0x9e   :  { %758 = vmatmul.mubr.msk.bf16.vlgmr.msra.gmra.mxu1 %vm1519_vm5, %v55_v7  ;;  %vm1556_vm5 = vmmov %vm1554_vm0 }
  0x9f   :  { %627 = vmatprep.mubr.bf16.mxu1 %v1017_v8 }
 0x156   :  { %v289_v29 = vpop.f32.mrf.mxu0 }
 0x157   :  { %v348_v32 = vmul.f32 %v289_v29, %v289_v29 }
 0x158   :  { %v291_v30 = vpop.f32.mrf.mxu0 }
 0x159   :  { %v349_v33 = vmul.f32 %v291_v30, %v291_v30  ;;  %v343_v35 = vadd.f32 %v291_v30, %v289_v29 }
 0x15a   :  { %v293_v31 = vpop.f32.mrf.mxu0 }
 0x15b   :  { %v352_v42 = vadd.f32 %v349_v33, %v348_v32 }
 0x15c   :  { %v294_v34 = vpop.f32.mrf.mxu0 }
 0x15e   :  { %v336_v38 = vpop.f32.mrf.mxu1 }
 0x15f   :  { %v350_v40 = vmul.f32 %v336_v38, %v336_v38  ;;  %v344_v41 = vadd.f32 %v343_v35, %v336_v38 }
 0x160   :  { %v338_v43 = vpop.f32.mrf.mxu1 }
 0x161   :  { %v345_v44 = vadd.f32 %v344_v41, %v338_v43  ;;  %v351_v45 = vmul.f32 %v338_v43, %v338_v43  ;;  %v353_v46 = vadd.f32 %v352_v42, %v350_v40 }
 0x162   :  { %v340_v47 = vpop.f32.mrf.mxu1 }
 0x163   :  { %346 = vadd.xlane.f32.xlu0 %v345_v44  ;;  %v354_v48 = vadd.f32 %v353_v46, %v351_v45 }
 0x164   :  { %v341_v49 = vpop.f32.mrf.mxu1 }
 0x165   :  { %355 = vadd.xlane.f32.xlu1 %v354_v48 }
 0x1ec   :  { %v347_v8 = vpop.xlane.xlu0 %346 }
 0x1ed   :  { %v357_v50 = vmul.f32 0.001953125, %v347_v8 }
 0x1ee   :  { %v356_v51 = vpop.xlane.xlu1 %355 }
 0x1ef   :  { %v359_v36 = vmul.f32 %v357_v50, %v357_v50  ;;  %v358_v53 = vmul.f32 0.001953125, %v356_v51 }
 0x1f1   :  { %v360_v55 = vsub.f32 %v358_v53, %v359_v36 }
 0x1f3   :  { %v362_v56 = vadd.f32 1e-05, %v360_v55 }
 0x1f5   :  { %985 = vrsqrt.f32 %v362_v56 }
 0x202   :  { %v986_v60 = vpop.eup %985 }
 0x203   :  { %v364_v21 = vmul.f32 %v986_v60, %v361_v57 }
 0x205   :  { %370 = vperm.xlu0 %903, %v364_v21   ;;  %v366_v62 = vmul.f32 %v364_v21, %v357_v50 }
 0x207   :  { %v367_v63 = vsub.f32 %v365_v61, %v366_v62 }
 0x209   :  { %379 = vperm.xlu1 %904, %v367_v63  }
 0x280   :  { %v371_v0 = vpop.permute.xlu0 %370 }
 0x281   :  { %v373_v1 = vmul.f32 %v371_v0, %v289_v29  ;;  %v374_v6 = vmul.f32 %v371_v0, %v291_v30  ;;  %v375_v7 = vmul.f32 %v371_v0, %v336_v38  ;;  %v376_v9 = vmul.f32 %v371_v0, %v338_v43 }
 0x284   :  { %v380_v11 = vpop.permute.xlu1 %379 }
 0x285   :  { %v1332_v13 = vadd.f32 %v380_v11, %v373_v1  ;;  %v1334_v15 = vadd.f32 %v380_v11, %v374_v6  ;;  %v1336_v16 = vadd.f32 %v380_v11, %v375_v7  ;;  %v1338_v17 = vadd.f32 %v380_v11, %v376_v9 }
 0x287   :  { %v386_v18 = vmax.f32 %v1332_v13, 0.0  ;;  %v387_v22 = vmax.f32 %v1334_v15, 0.0  ;;  %v388_v23 = vmax.f32 %v1336_v16, 0.0  ;;  %v389_v24 = vmax.f32 %v1338_v17, 0.0 }
 0x289   :  { %v935_v25 = vpack.i.bf16 %v389_v24, %v388_v23  ;;  %v905_v26 = vpack.i.bf16 %v387_v22, %v386_v18 }
 0x28b   :  { %936 = vrot.lane.b32.xlu0 %v935_v25, %s1013_s0  ;;  %906 = vrot.lane.b32.xlu1 %v905_v26, %s1012_s29 }
 0x28f   :  { %946 = vrot.lane.b32.xlu0 %v905_v26, %s1016_s9  ;;  %911 = vrot.lane.b32.xlu1 %v935_v25, %s1012_s29 }
 0x293   :  { %956 = vrot.lane.b32.xlu0 %v905_v26, %s1019_s11  ;;  %916 = vrot.lane.b32.xlu1 %v905_v26, %s1011_s28 }
 0x297   :  { %966 = vrot.lane.b32.xlu0 %v935_v25, %s1015_s8  ;;  %921 = vrot.lane.b32.xlu1 %v905_v26, %s1013_s0 }
 0x29b   :  { %976 = vrot.lane.b32.xlu0 %v935_v25, %s1019_s11  ;;  %926 = vrot.lane.b32.xlu1 %v905_v26, %s1014_s30 }
 0x29f   :  { %931 = vrot.lane.b32.xlu1 %v935_v25, %s1011_s28 }
 0x2a3   :  { %941 = vrot.lane.b32.xlu1 %v905_v26, %s1015_s8 }
 0x2a7   :  { %951 = vrot.lane.b32.xlu1 %v935_v25, %s1014_s30 }
 0x2ab   :  { %961 = vrot.lane.b32.xlu1 %v905_v26, %s1018_s10 }
 0x2af   :  { %971 = vrot.lane.b32.xlu1 %v935_v25, %s1016_s9 }
 0x2b3   :  { %981 = vrot.lane.b32.xlu1 %v935_v25, %s1018_s10 }
 0x2fd   :  { %v907_v27 = vpop.permute.xlu1 %906  ;;  %v937_v51 = vpop.permute.xlu0 %936 }
 0x2fe   :  { %v909_v28 = vunpack.i.h.bf16 %v907_v27  ;;  %v908_v29 = vunpack.i.l.bf16 %v907_v27  ;;  %v939_v1 = vunpack.i.h.bf16 %v937_v51  ;;  %v938_v6 = vunpack.i.l.bf16 %v937_v51 }
 0x300   :  { %v511_v30 = vsel %vm1553_vm9, %v908_v29, %v909_v28  ;;  %v513_v31 = vsel %vm1554_vm0, %v909_v28, %v908_v29  ;;  %vm1557_vm9 = vcmask 1043456  }
 0x301   :  { %v516_v32 = vsel %vm1113_vm3, %v513_v31, 0.0  ;;  %v912_v33 = vpop.permute.xlu1 %911  ;;  %v515_v34 = vsel %vm1117_vm4, %v511_v30, 0.0  ;;  %vm1558_vm0 = vmmov %vm1557_vm9  ;;  %v947_v7 = vpop.permute.xlu0 %946 }
 0x302   :  { %v914_v35 = vunpack.i.h.bf16 %v912_v33  ;;  %v913_v38 = vunpack.i.l.bf16 %v912_v33  ;;  %v528_v40 = vpack.c.bf16 %v516_v32, %v516_v32  ;;  %v527_v41 = vpack.c.bf16 %v515_v34, %v515_v34 }
 0x303   :  { %v949_v32 = vunpack.i.h.bf16 %v947_v7  ;;  %v948_v33 = vunpack.i.l.bf16 %v947_v7 }
 0x304   :  { %v512_v42 = vsel %vm1555_vm7, %v913_v38, %v914_v35  ;;  %v514_v43 = vsel %vm1556_vm5, %v914_v35, %v913_v38  ;;  %759 = vmatprep.subr.msk.bf16.mxu0 %vm1557_vm9, %v528_v40  ;;  %v543_v46 = vsel %vm1558_vm0, %v527_v41, 0  ;;  %vm1559_vm7 = vmmov %vm1558_vm0 }
 0x305   :  { %v518_v44 = vsel %vm1113_vm3, %v514_v43, 0.0  ;;  %v917_v45 = vpop.permute.xlu1 %916  ;;  %v517_v47 = vsel %vm1117_vm4, %v512_v42, 0.0  ;;  %555 = vmatpush1.bf16.msra.mxu0 %v543_v46  ;;  %vm1560_vm5 = vmmov %vm1558_vm0  ;;  %vm1561_vm3 = vcmp.lt.s32.totalorder %v1101_v10, 113  ;;  %vm1563_vm4 = vcmp.lt.s32.totalorder %v1101_v10, 112 }
 0x306   :  { %v538_v48 = vpack.c.bf16 %v518_v44, %v518_v44  ;;  %v537_v49 = vpack.c.bf16 %v517_v47, %v517_v47  ;;  %v919_v8 = vunpack.i.h.bf16 %v917_v45  ;;  %v918_v50 = vunpack.i.l.bf16 %v917_v45  ;;  %vm1562_vm9 = vmmov %vm1561_vm3 }
 0x307   :  { %vm1564_vm0 = vmmov %vm1563_vm4  ;;  %v447_v41 = vsel %vm127_vm6, %v948_v33, %v949_v32  ;;  %v449_v42 = vsel %vm127_vm6, %v949_v32, %v948_v33 }
 0x308   :  { %785 = vmatprep.subr.msk.bf16.mxu1 %vm1559_vm7, %v538_v48  ;;  %v590_v19 = vsel %vm1560_vm5, %v537_v49, 0  ;;  %v479_v56 = vsel %vm1561_vm3, %v918_v50, %v919_v8  ;;  %v481_v20 = vsel %vm1562_vm9, %v919_v8, %v918_v50  ;;  %vm1565_vm7 = vcmp.lt.s32.totalorder %v1101_v10, 127  ;;  %vm1567_vm3 = vmmov %vm1564_vm0 }
 0x309   :  { %v922_v36 = vpop.permute.xlu1 %921  ;;  %602 = vmatpush1.bf16.msra.mxu1 %v590_v19  ;;  %vm1566_vm5 = vmmov %vm1565_vm7  ;;  %v496_v30 = vsel %vm1567_vm3, %v938_v6, %v939_v1 }
 0x30a   :  { %v924_v53 = vunpack.i.h.bf16 %v922_v36  ;;  %v923_v55 = vunpack.i.l.bf16 %v922_v36  ;;  %vm1568_vm9 = vmmov %vm1564_vm0 }
 0x30b   :  { %v498_v31 = vsel %vm1568_vm9, %v939_v1, %v938_v6 }
 0x30c   :  { %v495_v57 = vsel %vm1563_vm4, %v923_v55, %v924_v53  ;;  %v497_v60 = vsel %vm1564_vm0, %v924_v53, %v923_v55  ;;  %vm1569_vm4 = vcmp.lt.s32.totalorder %v1101_v10, 113 }
 0x30d   :  { %v761_v21 = vpack.c.bf16 %v497_v60, %v481_v20  ;;  %v764_v61 = vpack.c.bf16 %v495_v57, %v479_v56  ;;  %v927_v62 = vpop.permute.xlu1 %926  ;;  %vm1570_vm0 = vmmov %vm1569_vm4 }
 0x30e   :  { %v929_v63 = vunpack.i.h.bf16 %v927_v62  ;;  %v928_v0 = vunpack.i.l.bf16 %v927_v62 }
 0x30f   :  { %762 = vmatprep.subr.msk.bf16.mxu0 %vm1148_vm12, %v761_v21 }
 0x310   :  { %v463_v9 = vsel %vm1565_vm7, %v928_v0, %v929_v63  ;;  %v465_v11 = vsel %vm1566_vm5, %v929_v63, %v928_v0  ;;  %765 = vmatpush1.bf16.msk.msra.mxu0 %vm1169_vm14, %v764_v61  ;;  %vm1571_vm7 = vcmp.lt.s32.totalorder %v1101_v10, 15 }
 0x311   :  { %v767_v25 = vpack.c.bf16 %v465_v11, %v387_v22  ;;  %v770_v26 = vpack.c.bf16 %v463_v9, %v386_v18  ;;  %v932_v27 = vpop.permute.xlu1 %931  ;;  %v957_v18 = vpop.permute.xlu0 %956  ;;  %vm1572_vm5 = vmmov %vm1571_vm7  ;;  %v390_v11 = vld [vmem:[%s1507_s4] sm:$0xf] }
 0x312   :  { %v934_v28 = vunpack.i.h.bf16 %v932_v27  ;;  %v933_v29 = vunpack.i.l.bf16 %v932_v27  ;;  %v959_v8 = vunpack.i.h.bf16 %v957_v18  ;;  %v958_v50 = vunpack.i.l.bf16 %v957_v18 }
 0x313   :  { %768 = vmatprep.subr.msk.bf16.mxu0 %vm1180_vm15, %v767_v25 }
 0x314   :  { %v480_v15 = vsel %vm1569_vm4, %v933_v29, %v934_v28  ;;  %v482_v13 = vsel %vm1570_vm0, %v934_v28, %v933_v29  ;;  %771 = vmatpush1.bf16.msk.msra.mxu0 %vm1200_vm2, %v770_v26  ;;  %vm1578_vm4 = vmmov %vm1572_vm5 }
 0x315   :  { %v787_v22 = vpack.c.bf16 %v498_v31, %v482_v13  ;;  %v790_v34 = vpack.c.bf16 %v496_v30, %v480_v15  ;;  %v942_v35 = vpop.permute.xlu1 %941  ;;  %v967_v49 = vpop.permute.xlu0 %966 }
 0x316   :  { %v944_v38 = vunpack.i.h.bf16 %v942_v35  ;;  %v943_v40 = vunpack.i.l.bf16 %v942_v35  ;;  %v969_v20 = vunpack.i.h.bf16 %v967_v49  ;;  %v968_v57 = vunpack.i.l.bf16 %v967_v49 }
 0x317   :  { %788 = vmatprep.subr.msk.bf16.mxu1 %vm1148_vm12, %v787_v22  ;;  %vm1573_vm12 = vcmp.lt.s32.totalorder %v1101_v10, 127 }
 0x318   :  { %v431_v43 = vsel %vm1571_vm7, %v943_v40, %v944_v38  ;;  %v433_v44 = vsel %vm1572_vm5, %v944_v38, %v943_v40  ;;  %791 = vmatpush1.bf16.msk.msra.mxu1 %vm1169_vm14, %v790_v34  ;;  %vm1574_vm3 = vmmov %vm1573_vm12  ;;  %vm1575_vm14 = vcmp.lt.s32.totalorder %v1101_v10, 17  ;;  %v434_v1 = vsel %vm1578_vm4, %v969_v20, %v968_v57 }
 0x319   :  { %v773_v45 = vpack.c.bf16 %v447_v41, %v431_v43  ;;  %v776_v46 = vpack.c.bf16 %v449_v42, %v433_v44  ;;  %v952_v47 = vpop.permute.xlu1 %951  ;;  %v399_v60 = vsel %vm1575_vm14, %v958_v50, %v959_v8  ;;  %vm1576_vm9 = vmmov %vm1575_vm14 }
 0x31a   :  { %v954_v39 = vunpack.i.h.bf16 %v952_v47  ;;  %v953_v48 = vunpack.i.l.bf16 %v952_v47  ;;  %v401_v21 = vsel %vm1576_vm9, %v959_v8, %v958_v50  ;;  %vm1580_vm0 = vmmov %vm1576_vm9 }
 0x31b   :  { %774 = vmatprep.subr.msk.bf16.mxu0 %vm1244_vm1, %v773_v45 }
 0x31c   :  { %v464_v51 = vsel %vm1573_vm12, %v953_v48, %v954_v39  ;;  %v466_v36 = vsel %vm1574_vm3, %v954_v39, %v953_v48  ;;  %777 = vmatpush1.bf16.msk.msra.mxu0 %vm1254_vm10, %v776_v46 }
 0x31d   :  { %v793_v54 = vpack.c.bf16 %v466_v36, %v389_v24  ;;  %v796_v19 = vpack.c.bf16 %v464_v51, %v388_v23  ;;  %v962_v53 = vpop.permute.xlu1 %961  ;;  %v977_v23 = vpop.permute.xlu0 %976 }
 0x31e   :  { %v964_v55 = vunpack.i.h.bf16 %v962_v53  ;;  %v963_v56 = vunpack.i.l.bf16 %v962_v53  ;;  %v979_v6 = vunpack.i.h.bf16 %v977_v23  ;;  %v978_v7 = vunpack.i.l.bf16 %v977_v23 }
 0x31f   :  { %794 = vmatprep.subr.msk.bf16.mxu1 %vm1180_vm15, %v793_v54  ;;  %vm1577_vm15 = vmmov %vm1572_vm5  ;;  %v654_v54 = vld [vmem:[%s1508_s5] sm:$0xff]  ;;  %s1021_s5 = smov [#allocation2]  }
 0x320   :  { %v415_v17 = vsel %vm85_vm8, %v963_v56, %v964_v55  ;;  %v417_v16 = vsel %vm85_vm8, %v964_v55, %v963_v56  ;;  %797 = vmatpush1.bf16.msk.msra.mxu1 %vm1200_vm2, %v796_v19  ;;  %v432_v0 = vsel %vm1577_vm15, %v968_v57, %v969_v20  ;;  %vm1579_vm2 = vcmask 588800   ;;  %v658_v55 = vld [vmem:[%s1509_s6] sm:$0xff]  ;;  %s696_s20 = sshll.u32 %s1021_s5, 4  ;;  %s697_s20 = int_to_ptr.vmem [resolvable:$true] %s696_s20 }
 0x321   :  { %v779_v24 = vpack.c.bf16 %v415_v17, %v399_v60  ;;  %v782_v61 = vpack.c.bf16 %v417_v16, %v401_v21  ;;  %v972_v58 = vpop.permute.xlu1 %971  ;;  %v400_v30 = vsel %vm1580_vm0, %v978_v7, %v979_v6  ;;  %s989_s6 = scalar_lea.vmem %s697_s20, 512  ;;  %p994_p1 = scmp.lt.s32.totalorder %s697_s20, %s697_s20 }
 0x322   :  { %v974_v62 = vunpack.i.h.bf16 %v972_v58  ;;  %v973_v63 = vunpack.i.l.bf16 %v972_v58  ;;  %p990_p0 = scmp.ne.s32.totalorder %s697_s20, %s989_s6  ;;  %p995_p2 = scmp.lt.s32.totalorder %s989_s6, %s989_s6 }
 0x323   :  { %780 = vmatprep.subr.msk.bf16.mxu0 %vm1279_vm11, %v779_v24 }
 0x324   :  { %v448_v12 = vsel %vm127_vm6, %v973_v63, %v974_v62  ;;  %v450_v9 = vsel %vm127_vm6, %v974_v62, %v973_v63  ;;  %783 = vmatpush1.bf16.msk.msra.mxu0 %vm1287_vm13, %v782_v61  ;;  %vm1581_vm6 = vmmov %vm1580_vm0  ;;  %p996_p3 = por %p995_p2, %p994_p1 }
 0x325   :  { %v799_v25 = vpack.c.bf16 %v448_v12, %v432_v0  ;;  %v802_v26 = vpack.c.bf16 %v450_v9, %v434_v1  ;;  %v982_v27 = vpop.permute.xlu1 %981  ;;  %v402_v31 = vsel %vm1581_vm6, %v979_v6, %v978_v7 }
 0x326   :  { %v984_v28 = vunpack.i.h.bf16 %v982_v27  ;;  %v983_v29 = vunpack.i.l.bf16 %v982_v27  ;;  %p997_p4 = pnand %p996_p3, %p990_p0 }
 0x327   :  { %784 = vmatmul.mubr.msk.bf16.vlgmr.msra.gmra.mxu0 %vm1579_vm2, %v390_v11  ;;  %800 = vmatprep.subr.msk.bf16.mxu1 %vm1244_vm1, %v799_v25  ;;  %vm1582_vm1 = vmmov %vm1579_vm2 }
 0x328   :  { %v416_v32 = vsel %vm85_vm8, %v983_v29, %v984_v28  ;;  %v418_v33 = vsel %vm85_vm8, %v984_v28, %v983_v29  ;;  %803 = vmatpush1.bf16.msk.msra.mxu1 %vm1254_vm10, %v802_v26 }
 0x329   :  { %v805_v15 = vpack.c.bf16 %v416_v32, %v400_v30  ;;  %v808_v13 = vpack.c.bf16 %v418_v33, %v402_v31 }
 0x32b   :  { %806 = vmatprep.subr.msk.bf16.mxu1 %vm1279_vm11, %v805_v15 }
 0x32c   :  { %809 = vmatpush1.bf16.msk.msra.mxu1 %vm1287_vm13, %v808_v13 }
 0x32f   :  { %810 = vmatmul.mubr.msk.bf16.vlgmr.msra.gmra.mxu1 %vm1582_vm1, %v390_v11 }
 0x3e7   :  { %v582_v37 = vpop.f32.mrf.mxu0 }
 0x3e8   :  { %v641_v34 = vmul.f32 %v582_v37, %v582_v37 }
 0x3e9   :  { %v584_v18 = vpop.f32.mrf.mxu0 }
 0x3ea   :  { %v642_v35 = vmul.f32 %v584_v18, %v584_v18  ;;  %v636_v38 = vadd.f32 %v584_v18, %v582_v37 }
 0x3eb   :  { %v586_v22 = vpop.f32.mrf.mxu0 }
 0x3ec   :  { %v645_v42 = vadd.f32 %v642_v35, %v641_v34 }
 0x3ed   :  { %v587_v10 = vpop.f32.mrf.mxu0 }
 0x3ef   :  { %v629_v40 = vpop.f32.mrf.mxu1 }
 0x3f0   :  { %v643_v14 = vmul.f32 %v629_v40, %v629_v40  ;;  %v637_v41 = vadd.f32 %v636_v38, %v629_v40 }
 0x3f1   :  { %v631_v43 = vpop.f32.mrf.mxu1 }
 0x3f2   :  { %v638_v44 = vadd.f32 %v637_v41, %v631_v43  ;;  %v644_v52 = vmul.f32 %v631_v43, %v631_v43  ;;  %v646_v45 = vadd.f32 %v645_v42, %v643_v14 }
 0x3f3   :  { %v633_v46 = vpop.f32.mrf.mxu1 }
 0x3f4   :  { %639 = vadd.xlane.f32.xlu0 %v638_v44  ;;  %v647_v59 = vadd.f32 %v646_v45, %v644_v52 }
 0x3f5   :  { %v634_v47 = vpop.f32.mrf.mxu1 }
 0x3f6   :  { %648 = vadd.xlane.f32.xlu1 %v647_v59 }
 0x47d   :  { %v640_v39 = vpop.xlane.xlu0 %639 }
 0x47e   :  { %v650_v48 = vmul.f32 0.001953125, %v640_v39 }
 0x47f   :  { %v649_v49 = vpop.xlane.xlu1 %648 }
 0x480   :  { %v652_v8 = vmul.f32 %v650_v48, %v650_v48  ;;  %v651_v50 = vmul.f32 0.001953125, %v649_v49 }
 0x482   :  { %v653_v51 = vsub.f32 %v651_v50, %v652_v8 }
 0x484   :  { %v655_v36 = vadd.f32 1e-05, %v653_v51 }
 0x486   :  { %987 = vrsqrt.f32 %v655_v36 }
 0x493   :  { %v988_v19 = vpop.eup %987 }
 0x494   :  { %v657_v53 = vmul.f32 %v988_v19, %v654_v54 }
 0x496   :  { %663 = vperm.xlu0 %903, %v657_v53   ;;  %v659_v56 = vmul.f32 %v657_v53, %v650_v48 }
 0x498   :  { %v660_v20 = vsub.f32 %v658_v55, %v659_v56 }
 0x49a   :  { %672 = vperm.xlu1 %904, %v660_v20  }
 0x511   :  { %v664_v57 = vpop.permute.xlu0 %663 }
 0x512   :  { %v666_v60 = vmul.f32 %v664_v57, %v582_v37  ;;  %v667_v21 = vmul.f32 %v664_v57, %v584_v18  ;;  %v668_v17 = vmul.f32 %v664_v57, %v629_v40  ;;  %v669_v16 = vmul.f32 %v664_v57, %v631_v43 }
 0x515   :  { %v673_v23 = vpop.permute.xlu1 %672 }
 0x516   :  { %v675_v24 = vadd.f32 %v673_v23, %v666_v60  ;;  %v676_v61 = vadd.f32 %v673_v23, %v667_v21  ;;  %v677_v58 = vadd.f32 %v673_v23, %v668_v17  ;;  %v678_v62 = vadd.f32 %v673_v23, %v669_v16 }
 0x518   :  { %v679_v63 = vadd.f32 %v675_v24, %v1069_v2  ;;  %v680_v0 = vadd.f32 %v676_v61, %v1071_v3  ;;  %v681_v1 = vadd.f32 %v677_v58, %v1073_v4  ;;  %v682_v6 = vadd.f32 %v678_v62, %v1075_v5 }
 0x51a   :  { %v683_v7 = vmax.f32 %v679_v63, 0.0  ;;  %v684_v12 = vmax.f32 %v680_v0, 0.0  ;;  %v685_v9 = vmax.f32 %v681_v1, 0.0  ;;  %v686_v11 = vmax.f32 %v682_v6, 0.0 }
 0x51c   :  { %687 = vst [vmem:[#allocation2] sm:$0xff] %v683_v7  ;;  %688 = vst [vmem:[#allocation2 + $0x8] sm:$0xff] %v684_v12 }
 0x51d   :  { %689 = vst [vmem:[#allocation2 + $0x10] sm:$0xff] %v685_v9  ;;  %690 = vst [vmem:[#allocation2 + $0x18] sm:$0xff] %v686_v11 }
 0x51e   :  { %1000 = shalt.err (!%p997_p4)
}
 0x51f   :  { %s1022_s21 = smov 256  }
 0x520   :  { %702 = dma.vmem_to_hbm [thread:$0]  %s697_s20, 512, %s1510_s7, [#allocation3], %s1022_s21, %s1022_s21, %s1018_s10  }
 0x521   :  { %1009 = dma.done.wait [#allocation3], 512  }
 0x522   :  { %1010 = vsyncadd [#allocation3], 4294966784 }
 0x523   :  { %706 = vsyncpa [#allocation3], 1 }

</bundles_post_ra>
